<compile_context>
chip_gen: v7x
topology: tpu7x:2x2x1
jax: 0.10.0
libtpu: 0.0.40
codegen_flags: <defaults>
</compile_context>

<pallas_src>
import jax
import jax.numpy as jnp
from jax.experimental import pallas as pl
from jax.experimental.pallas import tpu as pltpu


def _vector_response_kernel(x_ref, v_ref,
                            wqa_ref, bqa_ref,    # (K, H), (1, H)  precomposed
                            wt_ref, bt_ref,      # (1, K), (1, 1)  precomposed
                            w1_ref, b1_ref,      # (1, H), (1, H)
                            wst_ref, bs_ref,     # (C, C), (1, C)
                            out_ref):
    x = x_ref[...].astype(jnp.float32)           # (tn, K)
    v = v_ref[...].astype(jnp.float32)           # (tn, C)

    xr = jnp.maximum(x, 0.0)                     # relu shared by both terms

    # qw2[n, j] = sum_h (relu(x) Wq^T + bq)[n, h] * W2[h, j]
    # (W2 contracted into the q_trans matmul on the host -> single MXU matmul)
    qw2 = jnp.dot(xr, wqa_ref[...],
                  preferred_element_type=jnp.float32) + bqa_ref[...]   # (tn, H)

    # t[n] = sum_h q[n, h] * b2[h]   (lane reduce over K lands on the XLU)
    t = jnp.sum(xr * wt_ref[...], axis=-1, keepdims=True) + bt_ref[...]  # (tn, 1)

    # inflat_fc layer 1: Linear(1, H) applied per (n, c) scalar, then ReLU.
    # Broadcasts are hoisted once per grid step (no in-kernel loops).
    w1b = w1_ref[...][None, :, :]                                     # (1, 1, H)
    b1b = b1_ref[...][None, :, :]                                     # (1, 1, H)
    h1 = jnp.maximum(v[:, :, None] * w1b + b1b, 0.0)                  # (tn, C, H)

    # score[n, c] = sum_h h1[n, c, h] * qw2[n, h] + t[n]
    # (lane-axis reduction goes to the XLU, free slots vs. the VALU-heavy h1)
    score = jnp.sum(h1 * qw2[:, None, :], axis=-1) + t                # (tn, C)

    # score_trans: ReLU -> Linear(C, C); weight pre-transposed to (C, C).
    score = jnp.dot(jnp.maximum(score, 0.0), wst_ref[...],
                    preferred_element_type=jnp.float32) + bs_ref[...]

    out_ref[...] = (score + v).astype(out_ref.dtype)


def _choose_block_n(N, C, H):
    """Row-tile size: as large as a ~8 MiB VMEM budget for the dominant
    (block_n, C, H) f32 intermediate allows (leaves headroom for the
    double-buffered I/O blocks and weights under v7x's smaller VMEM), keep
    >= 2 grid steps so the 'parallel' axis can shard across v7x's two
    TensorCores, and keep the sublane dim a multiple of 8 (or the full batch).
    """
    cap = max(8, (8 * 1024 * 1024) // (max(C * H, 1) * 4))
    target = min(N, cap)
    if N >= 16:
        target = min(target, N // 2)      # at least 2 grid steps
    for bn in range(target, 0, -1):
        if N % bn == 0 and (bn % 8 == 0 or bn == N):
            return bn
    return N


def vector_response_forward(x_vec, v_vec, params, *, block_n=None):
    """x_vec: (N, K), v_vec: (N, C).  Returns (N, C)."""
    N, K = x_vec.shape
    _, C = v_vec.shape
    wq, bq, w1, b1, w2, b2, ws, bs = params
    H = wq.shape[0]

    if block_n is None:
        block_n = _choose_block_n(N, C, H)
    assert N % block_n == 0, "N must be divisible by block_n"
    grid = (N // block_n,)

    f32 = jnp.float32
    # Host-side, one-time weight prep & algebraic precomposition (exact:
    # no nonlinearity between the composed linear maps).
    wq_t = wq.T.astype(f32)                              # (K, H)
    wqa = wq_t @ w2.astype(f32)                          # (K, H): relu(x) @ wqa
    bqa = (bq.astype(f32) @ w2.astype(f32)).reshape(1, H)
    wt = (wq_t @ b2.astype(f32)).reshape(1, K)           # (1, K)
    bt = jnp.dot(bq.astype(f32), b2.astype(f32)).reshape(1, 1)
    w1_2 = w1.reshape(1, H).astype(f32)                  # nn.Linear(1,H) weight (H,1)->(1,H)
    b1_2 = b1.reshape(1, H).astype(f32)
    ws_t = ws.T.astype(f32)                              # (C, C): relu(score) @ ws_t
    bs2 = bs.reshape(1, C).astype(f32)

    full = lambda shape: pl.BlockSpec(shape, lambda i: (0, 0))

    return pl.pallas_call(
        _vector_response_kernel,
        out_shape=jax.ShapeDtypeStruct((N, C), v_vec.dtype),
        grid=grid,
        in_specs=[
            pl.BlockSpec((block_n, K), lambda i: (i, 0)),   # x
            pl.BlockSpec((block_n, C), lambda i: (i, 0)),   # v
            full((K, H)),                                   # Wqa = Wq^T @ W2
            full((1, H)),                                   # bqa = bq @ W2
            full((1, K)),                                   # wt  = Wq^T @ b2
            full((1, 1)),                                   # bt  = bq . b2
            full((1, H)),                                   # W1 (flattened)
            full((1, H)),                                   # b1
            full((C, C)),                                   # Ws^T
            full((1, C)),                                   # bs
        ],
        out_specs=pl.BlockSpec((block_n, C), lambda i: (i, 0)),
        compiler_params=pltpu.CompilerParams(
            dimension_semantics=("parallel",)),
    )(x_vec, v_vec, wqa, bqa, wt, bt, w1_2, b1_2, ws_t, bs2)


def _reference_forward(x_vec, v_vec, params):
    """Pure-JAX reference mirroring the PyTorch module (k_id=None)."""
    wq, bq, w1, b1, w2, b2, ws, bs = params
    q = jnp.maximum(x_vec, 0.0) @ wq.T + bq                        # (N, H)
    h1 = jnp.maximum(
        v_vec[:, :, None] * w1.reshape(-1)[None, None, :]
        + b1[None, None, :], 0.0)                                  # (N, C, H)
    inflat = h1 @ w2.T + b2                                        # (N, C, H)
    score = jnp.sum(inflat * q[:, None, :], axis=2)                # (N, C)
    score = jnp.maximum(score, 0.0) @ ws.T + bs                    # (N, C)
    return score + v_vec


def _init_params(key, x_dim_in, v_dim_in, dim_inflat):
    ks = jax.random.split(key, 8)

    def xavier(k, shape):
        fan_in, fan_out = shape[1], shape[0]
        lim = (6.0 / (fan_in + fan_out)) ** 0.5
        return jax.random.uniform(k, shape, jnp.float32, -lim, lim)

    wq = xavier(ks[0], (dim_inflat, x_dim_in))
    bq = jax.random.normal(ks[1], (dim_inflat,), jnp.float32) * 0.01
    w1 = xavier(ks[2], (dim_inflat, 1))
    b1 = jax.random.normal(ks[3], (dim_inflat,), jnp.float32) * 0.01
    w2 = xavier(ks[4], (dim_inflat, dim_inflat))
    b2 = jax.random.normal(ks[5], (dim_inflat,), jnp.float32) * 0.01
    ws = xavier(ks[6], (v_dim_in, v_dim_in))
    bs = jax.random.normal(ks[7], (v_dim_in,), jnp.float32) * 0.01
    return (wq, bq, w1, b1, w2, b2, ws, bs)


if __name__ == "__main__":
    N = 16            # batch
    x_dim_in = 8      # K
    v_dim_in = 16     # C
    dim_inflat = 32   # H

    key = jax.random.PRNGKey(0)
    k_x, k_v, k_p = jax.random.split(key, 3)
    x_vec = jax.random.normal(k_x, (N, x_dim_in), jnp.float32)
    v_vec = jax.random.normal(k_v, (N, v_dim_in), jnp.float32)
    params = _init_params(k_p, x_dim_in, v_dim_in, dim_inflat)

    out = vector_response_forward(x_vec, v_vec, params)   # auto block_n (=8 here, 2 grid steps)
    out = jax.block_until_ready(out)

    ref = _reference_forward(x_vec, v_vec, params)
    assert out.shape == (N, v_dim_in)
    assert jnp.allclose(out, ref, atol=1e-3, rtol=1e-3), "mismatch vs reference"

    print("KERNEL_OK")
</pallas_src>

<mosaic_0001>
module attributes {stable_mosaic.version = 11 : i64} {
  func.func @_vector_response_kernel(%arg0: i32, %arg1: memref<8x8xf32, #tpu.memory_space<vmem>>, %arg2: memref<8x16xf32, #tpu.memory_space<vmem>>, %arg3: memref<8x32xf32, #tpu.memory_space<vmem>>, %arg4: memref<1x32xf32, #tpu.memory_space<vmem>>, %arg5: memref<1x8xf32, #tpu.memory_space<vmem>>, %arg6: memref<1x1xf32, #tpu.memory_space<vmem>>, %arg7: memref<1x32xf32, #tpu.memory_space<vmem>>, %arg8: memref<1x32xf32, #tpu.memory_space<vmem>>, %arg9: memref<16x16xf32, #tpu.memory_space<vmem>>, %arg10: memref<1x16xf32, #tpu.memory_space<vmem>>, %arg11: memref<8x16xf32, #tpu.memory_space<vmem>>) attributes {dimension_semantics = [#tpu.dimension_semantics<parallel>], iteration_bounds = array<i64: 2>, scalar_prefetch = 0 : i64, scratch_operands = 0 : i64, tpu.core_type = #tpu.core_type<tc>, window_params = [{transform_indices = @transform_0, window_bounds = array<i64: 8, 8>}, {transform_indices = @transform_1, window_bounds = array<i64: 8, 16>}, {pipeline_mode = #tpu.pipeline_mode<synchronous>, transform_indices = @transform_2, window_bounds = array<i64: 8, 32>}, {pipeline_mode = #tpu.pipeline_mode<synchronous>, transform_indices = @transform_3, window_bounds = array<i64: 1, 32>}, {pipeline_mode = #tpu.pipeline_mode<synchronous>, transform_indices = @transform_4, window_bounds = array<i64: 1, 8>}, {pipeline_mode = #tpu.pipeline_mode<synchronous>, transform_indices = @transform_5, window_bounds = array<i64: 1, 1>}, {pipeline_mode = #tpu.pipeline_mode<synchronous>, transform_indices = @transform_6, window_bounds = array<i64: 1, 32>}, {pipeline_mode = #tpu.pipeline_mode<synchronous>, transform_indices = @transform_7, window_bounds = array<i64: 1, 32>}, {pipeline_mode = #tpu.pipeline_mode<synchronous>, transform_indices = @transform_8, window_bounds = array<i64: 16, 16>}, {pipeline_mode = #tpu.pipeline_mode<synchronous>, transform_indices = @transform_9, window_bounds = array<i64: 1, 16>}, {transform_indices = @transform_10, window_bounds = array<i64: 8, 16>}]} {
    %c0 = arith.constant 0 : index
    %c0_0 = arith.constant 0 : index
    %0 = vector.load %arg1[%c0, %c0_0] : memref<8x8xf32, #tpu.memory_space<vmem>>, vector<8x8xf32>
    %c0_1 = arith.constant 0 : index
    %c0_2 = arith.constant 0 : index
    %1 = vector.load %arg2[%c0_1, %c0_2] : memref<8x16xf32, #tpu.memory_space<vmem>>, vector<8x16xf32>
    %cst = arith.constant 0.000000e+00 : f32
    %2 = vector.broadcast %cst : f32 to vector<8x8xf32>
    %3 = arith.maximumf %0, %2 : vector<8x8xf32>
    %c0_3 = arith.constant 0 : index
    %c0_4 = arith.constant 0 : index
    %4 = vector.load %arg3[%c0_3, %c0_4] : memref<8x32xf32, #tpu.memory_space<vmem>>, vector<8x32xf32>
    %cst_5 = arith.constant dense<0.000000e+00> : vector<8x32xf32>
    %5 = tpu.matmul %3, %4, %cst_5 {dimension_numbers = #tpu.dot_dimension_numbers<[1], [0], [0], [1], [0, 0, 1, 1], [], []>} : vector<8x8xf32>, vector<8x32xf32>, vector<8x32xf32> -> vector<8x32xf32>
    %c0_6 = arith.constant 0 : index
    %c0_7 = arith.constant 0 : index
    %6 = vector.load %arg4[%c0_6, %c0_7] : memref<1x32xf32, #tpu.memory_space<vmem>>, vector<1x32xf32>
    %7 = vector.broadcast %6 : vector<1x32xf32> to vector<8x32xf32>
    %8 = arith.addf %5, %7 : vector<8x32xf32>
    %c0_8 = arith.constant 0 : index
    %c0_9 = arith.constant 0 : index
    %9 = vector.load %arg5[%c0_8, %c0_9] : memref<1x8xf32, #tpu.memory_space<vmem>>, vector<1x8xf32>
    %10 = vector.broadcast %9 : vector<1x8xf32> to vector<8x8xf32>
    %11 = arith.mulf %3, %10 : vector<8x8xf32>
    %cst_10 = arith.constant dense<0.000000e+00> : vector<8xf32>
    %12 = vector.multi_reduction <add>, %11, %cst_10 [1] : vector<8x8xf32> to vector<8xf32>
    %13 = vector.shape_cast %12 : vector<8xf32> to vector<8x1xf32>
    %c0_11 = arith.constant 0 : index
    %c0_12 = arith.constant 0 : index
    %14 = vector.load %arg6[%c0_11, %c0_12] : memref<1x1xf32, #tpu.memory_space<vmem>>, vector<1x1xf32>
    %15 = vector.broadcast %14 : vector<1x1xf32> to vector<8x1xf32>
    %16 = arith.addf %13, %15 : vector<8x1xf32>
    %c0_13 = arith.constant 0 : index
    %c0_14 = arith.constant 0 : index
    %17 = vector.load %arg7[%c0_13, %c0_14] : memref<1x32xf32, #tpu.memory_space<vmem>>, vector<1x32xf32>
    %18 = vector.shape_cast %17 : vector<1x32xf32> to vector<1x1x32xf32>
    %c0_15 = arith.constant 0 : index
    %c0_16 = arith.constant 0 : index
    %19 = vector.load %arg8[%c0_15, %c0_16] : memref<1x32xf32, #tpu.memory_space<vmem>>, vector<1x32xf32>
    %20 = vector.shape_cast %19 : vector<1x32xf32> to vector<1x1x32xf32>
    %21 = vector.shape_cast %1 : vector<8x16xf32> to vector<8x16x1xf32>
    %22 = vector.broadcast %21 : vector<8x16x1xf32> to vector<8x16x32xf32>
    %23 = vector.broadcast %18 : vector<1x1x32xf32> to vector<8x16x32xf32>
    %24 = arith.mulf %22, %23 : vector<8x16x32xf32>
    %25 = vector.broadcast %20 : vector<1x1x32xf32> to vector<8x16x32xf32>
    %26 = arith.addf %24, %25 : vector<8x16x32xf32>
    %cst_17 = arith.constant 0.000000e+00 : f32
    %27 = vector.broadcast %cst_17 : f32 to vector<8x16x32xf32>
    %28 = arith.maximumf %26, %27 : vector<8x16x32xf32>
    %29 = vector.shape_cast %8 : vector<8x32xf32> to vector<8x1x32xf32>
    %30 = vector.broadcast %29 : vector<8x1x32xf32> to vector<8x16x32xf32>
    %31 = arith.mulf %28, %30 : vector<8x16x32xf32>
    %cst_18 = arith.constant dense<0.000000e+00> : vector<8x16xf32>
    %32 = vector.multi_reduction <add>, %31, %cst_18 [2] : vector<8x16x32xf32> to vector<8x16xf32>
    %33 = vector.broadcast %16 : vector<8x1xf32> to vector<8x16xf32>
    %34 = arith.addf %32, %33 : vector<8x16xf32>
    %cst_19 = arith.constant 0.000000e+00 : f32
    %35 = vector.broadcast %cst_19 : f32 to vector<8x16xf32>
    %36 = arith.maximumf %34, %35 : vector<8x16xf32>
    %c0_20 = arith.constant 0 : index
    %c0_21 = arith.constant 0 : index
    %37 = vector.load %arg9[%c0_20, %c0_21] : memref<16x16xf32, #tpu.memory_space<vmem>>, vector<16x16xf32>
    %cst_22 = arith.constant dense<0.000000e+00> : vector<8x16xf32>
    %38 = tpu.matmul %36, %37, %cst_22 {dimension_numbers = #tpu.dot_dimension_numbers<[1], [0], [0], [1], [0, 0, 1, 1], [], []>} : vector<8x16xf32>, vector<16x16xf32>, vector<8x16xf32> -> vector<8x16xf32>
    %c0_23 = arith.constant 0 : index
    %c0_24 = arith.constant 0 : index
    %39 = vector.load %arg10[%c0_23, %c0_24] : memref<1x16xf32, #tpu.memory_space<vmem>>, vector<1x16xf32>
    %40 = vector.broadcast %39 : vector<1x16xf32> to vector<8x16xf32>
    %41 = arith.addf %38, %40 : vector<8x16xf32>
    %42 = arith.addf %41, %1 : vector<8x16xf32>
    %c0_25 = arith.constant 0 : index
    %c0_26 = arith.constant 0 : index
    %43 = vector.load %arg11[%c0_25, %c0_26] : memref<8x16xf32, #tpu.memory_space<vmem>>, vector<8x16xf32>
    tpu.vector_store %arg11[%c0_25, %c0_26], %42 {strides = array<i32>} : memref<8x16xf32, #tpu.memory_space<vmem>>, vector<8x16xf32>,
    return
  }
  func.func @transform_0(%arg0: i32) -> (i32, i32) {
    %c0_i32 = arith.constant 0 : i32
    %c0_i32_0 = arith.constant 0 : i32
    return %arg0, %c0_i32 : i32, i32
  }
  func.func @transform_1(%arg0: i32) -> (i32, i32) {
    %c0_i32 = arith.constant 0 : i32
    %c0_i32_0 = arith.constant 0 : i32
    return %arg0, %c0_i32 : i32, i32
  }
  func.func @transform_2(%arg0: i32) -> (i32, i32) {
    %c0_i32 = arith.constant 0 : i32
    %c0_i32_0 = arith.constant 0 : i32
    %c0_i32_1 = arith.constant 0 : i32
    return %c0_i32, %c0_i32_0 : i32, i32
  }
  func.func @transform_3(%arg0: i32) -> (i32, i32) {
    %c0_i32 = arith.constant 0 : i32
    %c0_i32_0 = arith.constant 0 : i32
    %c0_i32_1 = arith.constant 0 : i32
    return %c0_i32, %c0_i32_0 : i32, i32
  }
  func.func @transform_4(%arg0: i32) -> (i32, i32) {
    %c0_i32 = arith.constant 0 : i32
    %c0_i32_0 = arith.constant 0 : i32
    %c0_i32_1 = arith.constant 0 : i32
    return %c0_i32, %c0_i32_0 : i32, i32
  }
  func.func @transform_5(%arg0: i32) -> (i32, i32) {
    %c0_i32 = arith.constant 0 : i32
    %c0_i32_0 = arith.constant 0 : i32
    %c0_i32_1 = arith.constant 0 : i32
    return %c0_i32, %c0_i32_0 : i32, i32
  }
  func.func @transform_6(%arg0: i32) -> (i32, i32) {
    %c0_i32 = arith.constant 0 : i32
    %c0_i32_0 = arith.constant 0 : i32
    %c0_i32_1 = arith.constant 0 : i32
    return %c0_i32, %c0_i32_0 : i32, i32
  }
  func.func @transform_7(%arg0: i32) -> (i32, i32) {
    %c0_i32 = arith.constant 0 : i32
    %c0_i32_0 = arith.constant 0 : i32
    %c0_i32_1 = arith.constant 0 : i32
    return %c0_i32, %c0_i32_0 : i32, i32
  }
  func.func @transform_8(%arg0: i32) -> (i32, i32) {
    %c0_i32 = arith.constant 0 : i32
    %c0_i32_0 = arith.constant 0 : i32
    %c0_i32_1 = arith.constant 0 : i32
    return %c0_i32, %c0_i32_0 : i32, i32
  }
  func.func @transform_9(%arg0: i32) -> (i32, i32) {
    %c0_i32 = arith.constant 0 : i32
    %c0_i32_0 = arith.constant 0 : i32
    %c0_i32_1 = arith.constant 0 : i32
    return %c0_i32, %c0_i32_0 : i32, i32
  }
  func.func @transform_10(%arg0: i32) -> (i32, i32) {
    %c0_i32 = arith.constant 0 : i32
    %c0_i32_0 = arith.constant 0 : i32
    return %arg0, %c0_i32 : i32, i32
  }
}

</mosaic_0001>

<bundles_post_ra>
// kernel: tpu_custom_call.1
= control target key start
LH: loop header
LB: loop body
LE: loop exit
PB: predicated region body
PF: predicated region fallthrough
CT: control target
= control target key end

     0   :  { %s1753_s0 = inlined_call_operand.vmem [shape: f32[16,8], index: 0, kind: input, shape index: {}]   ;;  %s1754_s1 = inlined_call_operand.vmem [shape: f32[16,16], index: 1, kind: input, shape index: {}]   ;;  %s1755_s2 = inlined_call_operand.hbm [shape: f32[8,32], index: 2, kind: input, shape index: {}]   ;;  %s1756_s3 = inlined_call_operand.vmem [shape: f32[1,32], index: 3, kind: input, shape index: {}]   ;;  %s1757_s4 = inlined_call_operand.vmem [shape: f32[1,8], index: 4, kind: input, shape index: {}]   ;;  %s1758_s5 = inlined_call_operand.<no memory space> [shape: f32[1,1], index: 5, kind: input, shape index: {}]   ;;  %s1759_s6 = inlined_call_operand.vmem [shape: f32[1,32], index: 6, kind: input, shape index: {}]   ;;  %s1760_s7 = inlined_call_operand.vmem [shape: f32[1,32], index: 7, kind: input, shape index: {}]   ;;  %s1761_s8 = inlined_call_operand.vmem [shape: f32[16,16], index: 8, kind: input, shape index: {}]   ;;  %s1762_s9 = inlined_call_operand.vmem [shape: f32[1,16], index: 9, kind: input, shape index: {}]   ;;  %s1763_s10 = inlined_call_operand.hbm [shape: f32[16,16], index: 10, kind: output, shape index: {}]  }
   0x1   :  { %v15_v0 = vstv %s1758_s5 }
   0x2   :  { %16 = vst [vmem:[#allocation2] sm:$0x1] %v15_v0 }
   0x3   :  { %17 = vsyncpa [#allocation4], 0 }
   0x4   :  { %18 = vsyncpa [#allocation5], 0 }
   0x5   :  { %20 = vsyncpa [#allocation5 + $0x1], 0  ;;  %s1466_s15 = smov 0   ;;  %s1468_s16 = smov 0  }
   0x6   :  { %s1470_s17 = smov 0   ;;  %s1472_s18 = smov 0  }
   0x7 LB: > { %s1487_s5 = sadd.s32 4294967295, %s1399_s18   ;;  %s1207_s19 = sadd.s32 4294967294, %s1399_s18   ;;  %s1399_s18 = sphi %s1472_s18, %s1779_s18   ;;  %s1395_s17 = sphi %s1470_s17, %s1778_s17   ;;  %s1391_s16 = sphi %s1468_s16, %s1777_s16   ;;  %s1387_s15 = sphi %s1466_s15, %s1776_s15  }
   0x8   : > { %s1491_s20 = sadd.s32 1, %s1399_s18   ;;  %s253_s21 = sadd.s32 1, %s1395_s17 }
   0x9   : > { %s250_s22 = ssub.s32 %s1399_s18, %s1491_s20  ;;  %p263_p0 = scmp.ne.s32.totalorder %s1395_s17, %s1391_s16 }
   0xa   : > { %p251_p1 = scmp.eq.s32.totalorder %s250_s22, 0  ;;  %p264_p2 = scmp.eq.s32.totalorder %s1487_s5, 1 }
   0xb   : > { %p269_p3 = scmp.ne.s32.totalorder %s1391_s16, %s1387_s15  ;;  %p270_p4 = scmp.eq.s32.totalorder %s1207_s19, 1 }
   0xc   : > { %s1502_s23 = scalar_select %p251_p1, %s1395_s17, %s253_s21  }
   0xd   : > { %p1504_p5 = por %p264_p2, %p263_p0  ;;  %p1508_p6 = por %p270_p4, %p269_p3 }
   0xe   : > { %p1208_p7 = scmp.ge.s32.totalorder %s1399_s18, 1  ;;  %p277_p8 = scmp.lt.s32.totalorder %s1399_s18, 3 }
   0xf   : > { %s1767_s24 = scalar_select %p1504_p5, 1, 0 }
  0x10   : > { %s1768_s25 = scalar_select %p1508_p6, 1, 0 }
  0x11   : > { %p1764_p9 = scmp.eq.s32.totalorder %s1487_s5, 0  ;;  %p1515_p10 = pnand %p1208_p7, %p277_p8 }
  0x12   : > { %s1401_s27 = smov [#allocation3]   ;;  %s1305_s12 = scalar_lea.hbm %s1755_s2, 128 }
  0x13   : > { %s1769_s26 = scalar_select %p1515_p10, 1, 0 }
  0x14   : > { %s290_s28 = sshll.u32 %s1401_s27, 4  ;;  %p1254_p11 = pneg %p1515_p10  ;;  %s291_s28 = int_to_ptr.vmem [resolvable:$true] %s290_s28 }
  0x15   : > { %p1306_p13 = scmp.ne.s32.totalorder %s1755_s2, %s1305_s12  ;;  %p1312_p3 = scmp.lt.u32.totalorder %s1305_s12, %s1755_s2 }
  0x16   : > { %p1523_p12 = pnand %p1764_p9, %p1254_p11 }
  0x18   : > { %p1307_p0 = pneg %p1523_p12 }
  0x1a   : > { %p1308_p1 = pnand %p1307_p0, %p1306_p13 }
  0x1c   : > { %p1309_p2 = pneg %p1308_p1 }
  0x1e   : > { %p1314_p4 = pnand %p1312_p3, %p1309_p2 }
  0x20   : > { %1317 = shalt.err (!%p1314_p4)
}
  0x21   : > { %s1318_s22 = scalar_lea.vmem %s291_s28, 128  ;;  %p1326_p9 = scmp.lt.s32.totalorder %s291_s28, %s291_s28 }
  0x22   : > { %p1319_p7 = scmp.ne.s32.totalorder %s291_s28, %s1318_s22  ;;  %p1327_p6 = scmp.lt.s32.totalorder %s1318_s22, %s1318_s22 }
  0x24   : > { %p1321_p8 = pnand %p1319_p7, %p1307_p0  ;;  %p1328_p5 = por %p1327_p6, %p1326_p9 }
  0x26   : > { %p1322_p11 = pneg %p1321_p8 }
  0x28   : > { %p1329_p10 = pnand %p1328_p5, %p1322_p11 }
  0x2a   : > { %1332 = shalt.err (!%p1329_p10)
}
  0x2b   : > { %1257 = dma.hbm_to_vmem [thread:$0]  (!%p1523_p12), %s1755_s2, 128, %s291_s28, [#allocation4]  }
  0x2c   : > { %p1771_p13 = scmp.ne.s32.totalorder %s1769_s26, 0 }
  0x2d   : > { %p1772_p1 = scmp.eq.s32.totalorder (!%p1771_p13), %s1487_s5, 0 }
  0x2e   : > { %338 = sbr.rel (%p1771_p13) target bundleno = 838 (0x346), region = 60 }
  0x35   : > { %1378 = dma.done.wait (%p1772_p1), [#allocation4], 128   ;;  %p1773_p0 = pmov %p1772_p1 }
  0x36   : > { %p379_p6 = scmp.lt.s32.totalorder %s1487_s5, 1  ;;  %v493_v1 = vlaneseq  ;;  %v1402_v2 = vmov 0.0   ;;  %vm1403_vm0 = vmmov 0   ;;  %v390_v6 = vld [vmem:[#allocation3] sm:$0xff]  ;;  %vm398_vm1 = vcmask 64512   ;;  %s376_s21 = sand.u32 1, %s1391_s16  }
  0x37   : > { %1380 = vsyncadd (%p1773_p0), [#allocation4], 4294967168  ;;  %1233 = vmatprep.subr.mxu0 %v1402_v2  ;;  %1235 = vmatprep.mubr.msk.f32.mxu0 %vm1403_vm0, %v1402_v2  ;;  %v1218_v10 = vld [vmem:[%s1757_s4] ss:$0 sm:$0xff]  ;;  %v1404_v19 = vmov 0   ;;  %vm747_vm2 = vcmask 261120  }
  0x38   : > { %s380_s29 = scalar_select %p379_p6, %s1487_s5, 1  ;;  %v1552_v3 = vshrl.u32 %v493_v1, 7  ;;  %1242 = vmatprep.mubr.msk.f32.mxu1 %vm1403_vm0, %v1402_v2  ;;  %1234 = vmatpush3.msra.mxu0 %v390_v6  ;;  %v1219_v28 = vld [vmem:[#allocation2] ss:$0 sm:$0xff]  ;;  %v1405_v36 = vmov 1966171168  }
  0x39   : > { %1303 = vset.pattern.permute.xlu1 %v1404_v19  ;;  %1304 = vset.pattern.permute.xlu0 %v1404_v19  ;;  %v644_v37 = vunpack.c.l.s4 %v1405_v36  ;;  %v1601_v39 = vld [vmem:[%s1759_s6] ss:$0 sm:$0xff]  ;;  %vm956_vm3 = vcmask 130112   ;;  %vm1021_vm4 = vcmask 1041409   ;;  %vm1023_vm5 = vcmask 1042434   ;;  %s1213_s22 = sshll.u32 %s376_s21, 3 }
  0x3a   : > { %s1214_s26 = sshll.u32 %s380_s29, 3  ;;  %v1555_v4 = vsub.s32 0, %v1552_v3  ;;  %v506_v5 = vsub.s32 1, %v1552_v3  ;;  %v517_v15 = vsub.s32 2, %v1552_v3  ;;  %v528_v17 = vsub.s32 3, %v1552_v3  ;;  %s1225_s29 = sshll.u32 %s1487_s5, 7 }
  0x3b   : > { %s382_s12 = scalar_lea.vmem %s1753_s0, %s1214_s26  ;;  %s386_s19 = scalar_lea.vmem %s1754_s1, %s1214_s26  ;;  %v539_v20 = vsub.s32 4, %v1552_v3  ;;  %v550_v22 = vsub.s32 5, %v1552_v3  ;;  %v561_v24 = vsub.s32 6, %v1552_v3  ;;  %v572_v26 = vsub.s32 7, %v1552_v3  ;;  %v1216_v47 = vld [vmem:[%s1756_s3] ss:$0 sm:$0xff] }
  0x3c   : > { %v387_v7 = vld [vmem:[%s382_s12] sm:$0xff]  ;;  %v645_v41 = vunpack.c.0.s8 %v644_v37  ;;  %vm1025_vm6 = vcmask 1043459   ;;  %vm1027_vm7 = vcmask 1044484   ;;  %vm1029_vm8 = vcmask 1045509   ;;  %s378_s26 = scalar_lea.vmem [#allocation6], %s1213_s22  ;;  %s1710_s13 = scalar_lea.hbm %s1763_s10, %s1225_s29 }
  0x3d   : > { %v1564_v8 = vld [vmem:[%s386_s19] sm:$0xff]  ;;  %v389_v9 = vmax.f32 %v387_v7, 0.0  ;;  %vm1031_vm9 = vcmask 1046534   ;;  %vm1033_vm10 = vcmask 1047559   ;;  %vm1035_vm11 = vcmask 130048   ;;  %s1124_s28 = sshll.u32 %s378_s26, 4  ;;  %s1712_s28 = int_to_ptr.vmem [resolvable:$true] %s1124_s28 }
  0x3e   : > { %v496_v11 = vrot.slane %v1564_v8, %v1555_v4  ;;  %v507_v13 = vrot.slane %v1564_v8, %v506_v5  ;;  %v518_v16 = vrot.slane %v1564_v8, %v517_v15  ;;  %v529_v18 = vrot.slane %v1564_v8, %v528_v17  ;;  %v1614_v48 = vld [vmem:[%s1760_s7] ss:$0 sm:$0xff]  ;;  %s1111_s14 = scalar_lea.sflag [#allocation5], %s376_s21  ;;  %s1333_s5 = scalar_lea.vmem %s1712_s28, 128 }
  0x3f   : > { %1236 = vmatmul.mubr.msk.f32.vlgmr.msra.gmra.mrb[0].mxu0 %vm398_vm1, %v389_v9  ;;  %v479_v12 = vmul.f32 %v1218_v10, %v389_v9  ;;  %v540_v21 = vrot.slane %v1564_v8, %v539_v20  ;;  %v551_v23 = vrot.slane %v1564_v8, %v550_v22  ;;  %v562_v25 = vrot.slane %v1564_v8, %v561_v24  ;;  %p1334_p5 = scmp.ne.s32.totalorder %s1712_s28, %s1333_s5  ;;  %p1774_p9 = scmp.ne.s32.totalorder %s1767_s24, 0 }
  0x40   : > { %502 = vbcast.lane.b32.xlu1 %v496_v11, 264  ;;  %v573_v27 = vrot.slane %v1564_v8, %v572_v26  ;;  %v648_v50 = vsub.s32 %v645_v41, %v1552_v3  ;;  %s1407_s19 = smov [#allocation6]  }
  0x41   : > { %v480_v14 = vsel %vm398_vm1, %v479_v12, 0.0  ;;  %p1335_p10 = pnand %p1334_p5, %p1774_p9  ;;  %s1337_s22 = sshll.u32 %s1407_s19, 4  ;;  %s1338_s22 = int_to_ptr.vmem [resolvable:$false] %s1337_s22 }
  0x42   : > { %481 = vadd.xlane.f32.xlu0 %v480_v14  ;;  %s1339_s27 = scalar_lea.vmem %s1338_s22, 256  ;;  %p1340_p2 = scmp.lt.s32.totalorder %s1712_s28, %s1338_s22 }
  0x43   : > { %p1336_p12 = pneg %p1335_p10  ;;  %p1341_p3 = scmp.lt.s32.totalorder %s1339_s27, %s1333_s5 }
  0x44   : > { %509 = vbcast.lane.b32.xlu1 %v507_v13, 256 }
  0x45   : > { %p1342_p4 = por %p1341_p3, %p1340_p2 }
  0x47   : > { %p1343_p7 = pnand %p1342_p4, %p1336_p12 }
  0x48   : > { %513 = vbcast.lane.b32.xlu1 %v507_v13, 264 }
  0x4c   : > { %520 = vbcast.lane.b32.xlu1 %v518_v16, 256 }
  0x50   : > { %524 = vbcast.lane.b32.xlu1 %v518_v16, 264 }
  0x54   : > { %531 = vbcast.lane.b32.xlu1 %v529_v18, 256 }
  0x58   : > { %535 = vbcast.lane.b32.xlu1 %v529_v18, 264  ;;  %498 = vbcast.lane.b32.xlu0 %v496_v11, 256 }
  0x5c   : > { %546 = vbcast.lane.b32.xlu1 %v540_v21, 264  ;;  %542 = vbcast.lane.b32.xlu0 %v540_v21, 256 }
  0x60   : > { %557 = vbcast.lane.b32.xlu1 %v551_v23, 264  ;;  %553 = vbcast.lane.b32.xlu0 %v551_v23, 256 }
  0x64   : > { %568 = vbcast.lane.b32.xlu1 %v562_v25, 264  ;;  %564 = vbcast.lane.b32.xlu0 %v562_v25, 256 }
  0x68   : > { %579 = vbcast.lane.b32.xlu1 %v573_v27, 264  ;;  %575 = vbcast.lane.b32.xlu0 %v573_v27, 256 }
  0xb2   : > { %v503_v31 = vpop.permute.xlu1 %502 }
  0xb3   : > { %v588_v43 = vmul.f32 %v1601_v39, %v503_v31 }
  0xb5   : > { %v610_v57 = vadd.f32 %v1614_v48, %v588_v43 }
  0xb6   : > { %v510_v32 = vpop.permute.xlu1 %509 }
  0xb7   : > { %v589_v44 = vmul.f32 %v1601_v39, %v510_v32  ;;  %v626_v11 = vmax.f32 %v610_v57, 0.0 }
  0xb9   : > { %v611_v58 = vadd.f32 %v1614_v48, %v589_v44 }
  0xba   : > { %v514_v33 = vpop.permute.xlu1 %513 }
  0xbb   : > { %v590_v45 = vmul.f32 %v1601_v39, %v514_v33  ;;  %v627_v12 = vmax.f32 %v611_v58, 0.0 }
  0xbd   : > { %v612_v59 = vadd.f32 %v1614_v48, %v590_v45 }
  0xbe   : > { %v521_v34 = vpop.permute.xlu1 %520 }
  0xbf   : > { %v591_v46 = vmul.f32 %v1601_v39, %v521_v34  ;;  %v628_v13 = vmax.f32 %v612_v59, 0.0 }
  0xc1   : > { %v613_v60 = vadd.f32 %v1614_v48, %v591_v46 }
  0xc2   : > { %v525_v35 = vpop.permute.xlu1 %524 }
  0xc3   : > { %v592_v61 = vmul.f32 %v1601_v39, %v525_v35  ;;  %v629_v14 = vmax.f32 %v613_v60, 0.0 }
  0xc5   : > { %v614_v16 = vadd.f32 %v1614_v48, %v592_v61 }
  0xc6   : > { %v532_v40 = vpop.permute.xlu1 %531 }
  0xc7   : > { %v593_v0 = vmul.f32 %v1601_v39, %v532_v40  ;;  %v630_v44 = vmax.f32 %v614_v16, 0.0 }
  0xc9   : > { %v615_v27 = vadd.f32 %v1614_v48, %v593_v0 }
  0xca   : > { %v536_v53 = vpop.permute.xlu1 %535 }
  0xcb   : > { %v631_v45 = vmax.f32 %v615_v27, 0.0  ;;  %v594_v46 = vmul.f32 %v1601_v39, %v536_v53 }
  0xcd   : > { %v616_v53 = vadd.f32 %v1614_v48, %v594_v46 }
  0xce   : > { %v547_v18 = vpop.permute.xlu1 %546 }
  0xcf   : > { %v482_v29 = vpop.xlane.xlu0 %481 }
  0xd0   : > { %v490_v30 = vadd.f32 %v1219_v28, %v482_v29  ;;  %v596_v28 = vmul.f32 %v1601_v39, %v547_v18 }
  0xd2   : > { %798 = vperm.xlu1 %1303, %v490_v30  }
  0xd3   : > { %v499_v38 = vpop.permute.xlu0 %498 }
  0xd4   : > { %v587_v42 = vmul.f32 %v1601_v39, %v499_v38 }
  0xd6   : > { %v609_v54 = vadd.f32 %v1614_v48, %v587_v42 }
  0xd7   : > { %v543_v49 = vpop.permute.xlu0 %542 }
  0xd8   : > { %v595_v51 = vmul.f32 %v1601_v39, %v543_v49  ;;  %v625_v6 = vmax.f32 %v609_v54, 0.0 }
  0xda   : > { %v617_v2 = vadd.f32 %v1614_v48, %v595_v51 }
  0xdb   : > { %v554_v19 = vpop.permute.xlu0 %553 }
  0xdc   : > { %v633_v29 = vmax.f32 %v617_v2, 0.0  ;;  %v597_v35 = vmul.f32 %v1601_v39, %v554_v19 }
  0xde   : > { %v619_v51 = vadd.f32 %v1614_v48, %v597_v35 }
  0xdf   : > { %v565_v49 = vpop.permute.xlu0 %564 }
  0xe3   : > { %v576_v19 = vpop.permute.xlu0 %575 }
 0x112   : > { %v468_v52 = vpop.f32.mrb[0].mxu0 }
 0x113   : > { %v469_v55 = vadd.f32 %v1216_v47, %v468_v52  ;;  %v1237_v56 = vpop.f32.mrb[1].mxu0  ;;  %v618_v47 = vadd.f32 %v1614_v48, %v596_v28  ;;  %v599_v52 = vmul.f32 %v1601_v39, %v565_v49 }
 0x114   : > { %v558_v56 = vpop.permute.xlu1 %557 }
 0x115   : > { %v642_v62 = vcombine.high %v469_v55, %v469_v55  ;;  %v649_v63 = vrot.slane %v469_v55, %v648_v50  ;;  %v634_v61 = vmax.f32 %v618_v47, 0.0  ;;  %v621_v0 = vadd.f32 %v1614_v48, %v599_v52 }
 0x117   : > { %v656_v7 = vrot.slane %v642_v62, %v648_v50  ;;  %v657_v9 = vcombine.high %v649_v63, %v649_v63  ;;  %v665_v10 = vrot.slane %v649_v63, %v648_v50  ;;  %v598_v62 = vmul.f32 %v1601_v39, %v558_v56 }
 0x118   : > { %v635_v63 = vmax.f32 %v619_v51, 0.0  ;;  %v637_v16 = vmax.f32 %v621_v0, 0.0 }
 0x119   : > { %v694_v21 = vrot.slane %v665_v10, %v1555_v4  ;;  %v687_v23 = vcombine.high %v665_v10, %v665_v10  ;;  %v679_v25 = vrot.slane %v657_v9, %v648_v50  ;;  %v672_v30 = vrot.slane %v656_v7, %v648_v50 }
 0x11a   : > { %v658_v36 = vcombine.high %v656_v7, %v656_v7 }
 0x11b   : > { %v732_v31 = vmul.f32 %v694_v21, %v626_v11  ;;  %v731_v32 = vmul.f32 %v694_v21, %v625_v6  ;;  %v702_v33 = vrot.slane %v687_v23, %v1555_v4  ;;  %v698_v34 = vrot.slane %v679_v25, %v1555_v4 }
 0x11c   : > { %v710_v37 = vrot.slane %v672_v30, %v1555_v4  ;;  %v689_v38 = vcombine.high %v679_v25, %v679_v25  ;;  %v686_v55 = vrot.slane %v658_v36, %v648_v50  ;;  %v688_v50 = vcombine.high %v672_v30, %v672_v30 }
 0x11d   : > { %v751_v40 = vsel %vm747_vm2, %v732_v31, 0.0  ;;  %v748_v41 = vsel %vm747_vm2, %v731_v32, 0.0  ;;  %v735_v42 = vmul.f32 %v702_v33, %v629_v14  ;;  %v733_v43 = vmul.f32 %v698_v34, %v627_v12  ;;  %v569_v12 = vpop.permute.xlu1 %568 }
 0x11e   : > { %752 = vadd.xlane.f32.xlu1 %v751_v40  ;;  %749 = vadd.xlane.f32.xlu0 %v748_v41  ;;  %v734_v54 = vmul.f32 %v698_v34, %v628_v13  ;;  %v739_v59 = vmul.f32 %v710_v37, %v633_v29  ;;  %v706_v60 = vrot.slane %v689_v38, %v1555_v4  ;;  %v632_v11 = vmax.f32 %v616_v53, 0.0 }
 0x11f   : > { %v760_v57 = vsel %vm747_vm2, %v735_v42, 0.0  ;;  %v754_v58 = vsel %vm747_vm2, %v733_v43, 0.0  ;;  %v736_v2 = vmul.f32 %v702_v33, %v630_v44  ;;  %v714_v10 = vrot.slane %v686_v55, %v1555_v4 }
 0x120   : > { %v757_v6 = vsel %vm747_vm2, %v734_v54, 0.0  ;;  %v772_v7 = vsel %vm747_vm2, %v739_v59, 0.0  ;;  %v737_v9 = vmul.f32 %v706_v60, %v631_v45  ;;  %v620_v13 = vadd.f32 %v1614_v48, %v598_v62 }
 0x121   : > { %v600_v14 = vmul.f32 %v1601_v39, %v569_v12  ;;  %v740_v18 = vmul.f32 %v710_v37, %v634_v61  ;;  %v763_v21 = vsel %vm747_vm2, %v736_v2, 0.0  ;;  %v741_v25 = vmul.f32 %v714_v10, %v635_v63  ;;  %v580_v31 = vpop.permute.xlu1 %579 }
 0x122   : > { %761 = vadd.xlane.f32.xlu1 %v760_v57  ;;  %755 = vadd.xlane.f32.xlu0 %v754_v58  ;;  %v766_v23 = vsel %vm747_vm2, %v737_v9, 0.0  ;;  %v718_v27 = vrot.slane %v688_v50, %v1555_v4  ;;  %v636_v28 = vmax.f32 %v620_v13, 0.0  ;;  %v601_v30 = vmul.f32 %v1601_v39, %v576_v19 }
 0x123   : > { %v622_v29 = vadd.f32 %v1614_v48, %v600_v14  ;;  %v775_v32 = vsel %vm747_vm2, %v740_v18, 0.0  ;;  %v778_v33 = vsel %vm747_vm2, %v741_v25, 0.0  ;;  %v738_v34 = vmul.f32 %v706_v60, %v632_v11 }
 0x124   : > { %v743_v35 = vmul.f32 %v718_v27, %v637_v16  ;;  %v602_v37 = vmul.f32 %v1601_v39, %v580_v31  ;;  %v623_v38 = vadd.f32 %v1614_v48, %v601_v30  ;;  %v742_v42 = vmul.f32 %v714_v10, %v636_v28 }
 0x125   : > { %v638_v36 = vmax.f32 %v622_v29, 0.0  ;;  %v769_v40 = vsel %vm747_vm2, %v738_v34, 0.0  ;;  %v690_v43 = vcombine.high %v686_v55, %v686_v55 }
 0x126   : > { %758 = vadd.xlane.f32.xlu0 %v757_v6  ;;  %773 = vadd.xlane.f32.xlu1 %v772_v7  ;;  %v784_v41 = vsel %vm747_vm2, %v743_v35, 0.0  ;;  %v624_v44 = vadd.f32 %v1614_v48, %v602_v37  ;;  %v639_v45 = vmax.f32 %v623_v38, 0.0  ;;  %v781_v46 = vsel %vm747_vm2, %v742_v42, 0.0 }
 0x127   : > { %v744_v47 = vmul.f32 %v718_v27, %v638_v36  ;;  %v722_v49 = vrot.slane %v690_v43, %v1555_v4 }
 0x128   : > { %v640_v39 = vmax.f32 %v624_v44, 0.0 }
 0x129   : > { %v787_v51 = vsel %vm747_vm2, %v744_v47, 0.0  ;;  %v745_v52 = vmul.f32 %v722_v49, %v639_v45 }
 0x12a   : > { %764 = vadd.xlane.f32.xlu0 %v763_v21  ;;  %767 = vadd.xlane.f32.xlu1 %v766_v23  ;;  %v746_v56 = vmul.f32 %v722_v49, %v640_v39 }
 0x12b   : > { %v790_v54 = vsel %vm747_vm2, %v745_v52, 0.0 }
 0x12c   : > { %v793_v55 = vsel %vm747_vm2, %v746_v56, 0.0  ;;  %v1406_v56 = vmov 0.0|0.0  }
 0x12d   : > { %1245 = vmatprep.subr.bf16.mxu1 %v1406_v56 }
 0x12e   : > { %776 = vadd.xlane.f32.xlu0 %v775_v32  ;;  %779 = vadd.xlane.f32.xlu1 %v778_v33 }
 0x132   : > { %770 = vadd.xlane.f32.xlu0 %v769_v40  ;;  %785 = vadd.xlane.f32.xlu1 %v784_v41 }
 0x136   : > { %782 = vadd.xlane.f32.xlu0 %v781_v46 }
 0x13a   : > { %788 = vadd.xlane.f32.xlu0 %v787_v51 }
 0x13e   : > { %791 = vadd.xlane.f32.xlu0 %v790_v54  ;;  %v873_v54 = vld [vmem:[%s1761_s8 + $0x8] sm:$0xff] }
 0x142   : > { %794 = vadd.xlane.f32.xlu0 %v793_v55 }
 0x151   : > { %v799_v48 = vpop.permute.xlu1 %798 }
 0x152   : > { %v803_v57 = vrot.slane %v799_v48, %v1555_v4  ;;  %v807_v63 = vrot.slane %v799_v48, %v506_v5  ;;  %v811_v4 = vrot.slane %v799_v48, %v517_v15  ;;  %v823_v18 = vrot.slane %v799_v48, %v550_v22 }
 0x153   : > { %v819_v23 = vrot.slane %v799_v48, %v539_v20  ;;  %v827_v29 = vrot.slane %v799_v48, %v561_v24  ;;  %v815_v20 = vrot.slane %v799_v48, %v528_v17  ;;  %v831_v41 = vrot.slane %v799_v48, %v572_v26  ;;  %v872_v26 = vld [vmem:[%s1761_s8] sm:$0xff] }
 0x154   : > { %v1246_v55 = vpack.c.bf16 %v873_v54, %v872_v26 }
 0x156   : > { %1247 = vmatpush3.bf16.msra.mxu1 %v1246_v55 }
 0x1ab   : > { %v753_v58 = vpop.xlane.xlu1 %752  ;;  %v750_v59 = vpop.xlane.xlu0 %749 }
 0x1ac   : > { %v841_v60 = vadd.f32 %v803_v57, %v753_v58  ;;  %v840_v53 = vadd.f32 %v803_v57, %v750_v59 }
 0x1ae   : > { %v857_v61 = vmax.f32 %v841_v60, 0.0  ;;  %v856_v62 = vmax.f32 %v840_v53, 0.0 }
 0x1af   : > { %v762_v0 = vpop.xlane.xlu1 %761  ;;  %v756_v2 = vpop.xlane.xlu0 %755 }
 0x1b0   : > { %v842_v50 = vadd.f32 %v807_v63, %v756_v2  ;;  %901 = vperm.xlu1 %1303, %v857_v61   ;;  %898 = vperm.xlu0 %1304, %v856_v62   ;;  %v844_v11 = vadd.f32 %v811_v4, %v762_v0  ;;  %v946_v61 = vand.u32 127, %v493_v1 }
 0x1b2   : > { %v858_v6 = vmax.f32 %v842_v50, 0.0  ;;  %v860_v16 = vmax.f32 %v844_v11, 0.0 }
 0x1b3   : > { %v759_v7 = vpop.xlane.xlu0 %758  ;;  %v774_v9 = vpop.xlane.xlu1 %773 }
 0x1b4   : > { %v843_v10 = vadd.f32 %v807_v63, %v759_v7  ;;  %904 = vperm.xlu1 %1303, %v858_v6   ;;  %v848_v15 = vadd.f32 %v819_v23, %v774_v9  ;;  %v951_v63 = vadd.s32 4294967288, %v946_v61  ;;  %v949_v6 = vsub.s32 %v946_v61, %v1552_v3 }
 0x1b6   : > { %v859_v12 = vmax.f32 %v843_v10, 0.0  ;;  %v864_v33 = vmax.f32 %v848_v15, 0.0  ;;  %v954_v50 = vsub.s32 %v951_v63, %v1552_v3 }
 0x1b7   : > { %v765_v13 = vpop.xlane.xlu0 %764  ;;  %v768_v14 = vpop.xlane.xlu1 %767 }
 0x1b8   : > { %907 = vperm.xlu1 %1303, %v859_v12   ;;  %v845_v5 = vadd.f32 %v811_v4, %v765_v13  ;;  %v846_v36 = vadd.f32 %v815_v20, %v768_v14 }
 0x1ba   : > { %v861_v27 = vmax.f32 %v845_v5, 0.0  ;;  %v862_v40 = vmax.f32 %v846_v36, 0.0 }
 0x1bb   : > { %v777_v19 = vpop.xlane.xlu0 %776  ;;  %v780_v21 = vpop.xlane.xlu1 %779 }
 0x1bc   : > { %v850_v25 = vadd.f32 %v823_v18, %v780_v21  ;;  %910 = vperm.xlu1 %1303, %v860_v16   ;;  %v849_v22 = vadd.f32 %v819_v23, %v777_v19 }
 0x1be   : > { %v866_v28 = vmax.f32 %v850_v25, 0.0  ;;  %v865_v37 = vmax.f32 %v849_v22, 0.0 }
 0x1bf   : > { %v771_v30 = vpop.xlane.xlu0 %770  ;;  %v786_v31 = vpop.xlane.xlu1 %785 }
 0x1c0   : > { %v852_v32 = vadd.f32 %v827_v29, %v786_v31  ;;  %913 = vperm.xlu1 %1303, %v861_v27   ;;  %928 = vperm.xlu0 %1304, %v866_v28   ;;  %v847_v24 = vadd.f32 %v815_v20, %v771_v30 }
 0x1c2   : > { %v868_v34 = vmax.f32 %v852_v32, 0.0  ;;  %v863_v44 = vmax.f32 %v847_v24, 0.0 }
 0x1c3   : > { %v783_v35 = vpop.xlane.xlu0 %782 }
 0x1c4   : > { %922 = vperm.xlu1 %1303, %v864_v33   ;;  %934 = vperm.xlu0 %1304, %v868_v34   ;;  %v851_v45 = vadd.f32 %v823_v18, %v783_v35 }
 0x1c6   : > { %v867_v17 = vmax.f32 %v851_v45, 0.0  ;;  %v1222_v45 = vld [vmem:[%s1762_s9] ss:$0 sm:$0xff] }
 0x1c7   : > { %v789_v38 = vpop.xlane.xlu0 %788 }
 0x1c8   : > { %925 = vperm.xlu1 %1303, %v865_v37   ;;  %v853_v47 = vadd.f32 %v827_v29, %v789_v38 }
 0x1ca   : > { %v869_v39 = vmax.f32 %v853_v47, 0.0 }
 0x1cb   : > { %v792_v42 = vpop.xlane.xlu0 %791 }
 0x1cc   : > { %v854_v43 = vadd.f32 %v831_v41, %v792_v42  ;;  %916 = vperm.xlu1 %1303, %v862_v40  }
 0x1ce   : > { %v870_v46 = vmax.f32 %v854_v43, 0.0 }
 0x1cf   : > { %v795_v49 = vpop.xlane.xlu0 %794 }
 0x1d0   : > { %919 = vperm.xlu1 %1303, %v863_v44   ;;  %940 = vperm.xlu0 %1304, %v870_v46   ;;  %v855_v51 = vadd.f32 %v831_v41, %v795_v49 }
 0x1d2   : > { %v871_v52 = vmax.f32 %v855_v51, 0.0 }
 0x1d4   : > { %931 = vperm.xlu1 %1303, %v867_v17  }
 0x1d8   : > { %937 = vperm.xlu1 %1303, %v869_v39  }
 0x1dc   : > { %943 = vperm.xlu1 %1303, %v871_v52  }
 0x22f   : > { %v902_v48 = vpop.permute.xlu1 %901  ;;  %v899_v0 = vpop.permute.xlu0 %898 }
 0x230   : > { %v955_v11 = vrot.slane %v902_v48, %v954_v50  ;;  %v950_v12 = vrot.slane %v899_v0, %v949_v6 }
 0x232   : > { %v957_v3 = vsel %vm956_vm3, %v955_v11, %v950_v12 }
 0x233   : > { %v905_v57 = vpop.permute.xlu1 %904 }
 0x234   : > { %v961_v13 = vrot.slane %v905_v57, %v949_v6 }
 0x237   : > { %v908_v58 = vpop.permute.xlu1 %907 }
 0x238   : > { %v965_v4 = vrot.slane %v908_v58, %v954_v50 }
 0x23a   : > { %v966_v1 = vsel %vm956_vm3, %v965_v4, %v961_v13 }
 0x23b   : > { %v911_v59 = vpop.permute.xlu1 %910  ;;  %v1022_v15 = vsel %vm1021_vm4, %v966_v1, %v957_v3 }
 0x23c   : > { %v970_v16 = vrot.slane %v911_v59, %v949_v6 }
 0x23f   : > { %v914_v60 = vpop.permute.xlu1 %913  ;;  %v929_v7 = vpop.permute.xlu0 %928 }
 0x240   : > { %v974_v10 = vrot.slane %v914_v60, %v954_v50  ;;  %v997_v30 = vrot.slane %v929_v7, %v949_v6 }
 0x242   : > { %v975_v19 = vsel %vm956_vm3, %v974_v10, %v970_v16 }
 0x243   : > { %v923_v53 = vpop.permute.xlu1 %922  ;;  %v935_v21 = vpop.permute.xlu0 %934  ;;  %v1024_v29 = vsel %vm1023_vm5, %v975_v19, %v1022_v15 }
 0x244   : > { %v988_v32 = vrot.slane %v923_v53, %v949_v6  ;;  %v1006_v33 = vrot.slane %v935_v21, %v949_v6 }
 0x247   : > { %v926_v62 = vpop.permute.xlu1 %925 }
 0x248   : > { %v992_v27 = vrot.slane %v926_v62, %v954_v50 }
 0x24a   : > { %v993_v20 = vsel %vm956_vm3, %v992_v27, %v988_v32 }
 0x24b   : > { %v917_v2 = vpop.permute.xlu1 %916 }
 0x24c   : > { %v979_v18 = vrot.slane %v917_v2, %v949_v6 }
 0x24f   : > { %v920_v9 = vpop.permute.xlu1 %919  ;;  %v941_v34 = vpop.permute.xlu0 %940 }
 0x250   : > { %v983_v14 = vrot.slane %v920_v9, %v954_v50  ;;  %v1015_v38 = vrot.slane %v941_v34, %v949_v6 }
 0x252   : > { %v984_v23 = vsel %vm956_vm3, %v983_v14, %v979_v18 }
 0x253   : > { %v932_v5 = vpop.permute.xlu1 %931  ;;  %v1026_v22 = vsel %vm1025_vm6, %v984_v23, %v1024_v29 }
 0x254   : > { %v1001_v25 = vrot.slane %v932_v5, %v954_v50  ;;  %v1028_v40 = vsel %vm1027_vm7, %v993_v20, %v1026_v22 }
 0x256   : > { %v1002_v35 = vsel %vm956_vm3, %v1001_v25, %v997_v30 }
 0x257   : > { %v938_v28 = vpop.permute.xlu1 %937  ;;  %v1030_v41 = vsel %vm1029_vm8, %v1002_v35, %v1028_v40 }
 0x258   : > { %v1010_v31 = vrot.slane %v938_v28, %v954_v50 }
 0x25a   : > { %v1011_v36 = vsel %vm956_vm3, %v1010_v31, %v1006_v33 }
 0x25b   : > { %v944_v37 = vpop.permute.xlu1 %943  ;;  %v1032_v43 = vsel %vm1031_vm9, %v1011_v36, %v1030_v41 }
 0x25c   : > { %v1019_v24 = vrot.slane %v944_v37, %v954_v50 }
 0x25e   : > { %v1020_v42 = vsel %vm956_vm3, %v1019_v24, %v1015_v38 }
 0x25f   : > { %v1034_v44 = vsel %vm1033_vm10, %v1020_v42, %v1032_v43 }
 0x260   : > { %1243 = vmatmul.mubr.msk.f32.vlgmr.msra.gmra.mrb[0].mxu1 %vm1035_vm11, %v1034_v44 }
 0x333   : > { %v1104_v46 = vpop.f32.mrb[0].mxu1 }
 0x334   : > { %v1105_v17 = vadd.f32 %v1222_v45, %v1104_v46  ;;  %v1244_v47 = vpop.f32.mrb[1].mxu1 }
 0x336   : > { %v1108_v49 = vadd.f32 %v1105_v17, %v1564_v8 }
 0x338   : > { %1109 = vst.msk [vmem:[%s378_s26] sm:$0xff] %vm1035_vm11, %v1108_v49 }
 0x339   : > { %1346 = shalt.err (!%p1343_p7)
}
 0x33a   : > { %s1347_s21 = scalar_lea.hbm %s1710_s13, 128  ;;  %s1351_s26 = scalar_lea.hbm %s1763_s10, 256 }
 0x33b   : > { %p1348_p8 = scmp.ne.s32.totalorder %s1710_s13, %s1347_s21  ;;  %p1352_p1 = scmp.lt.u32.totalorder %s1710_s13, %s1763_s10 }
 0x33c   : > { %p1353_p0 = scmp.lt.u32.totalorder %s1351_s26, %s1347_s21  ;;  %p1355_p5 = scmp.lt.u32.totalorder %s1347_s21, %s1710_s13 }
 0x33d   : > { %p1349_p11 = pnand %p1348_p8, %p1774_p9 }
 0x33e   : > { %p1354_p6 = por %p1353_p0, %p1352_p1 }
 0x33f   : > { %p1350_p13 = pneg %p1349_p11 }
 0x340   : > { %p1356_p10 = por %p1355_p5, %p1354_p6 }
 0x342   : > { %p1357_p12 = pnand %p1356_p10, %p1350_p13 }
 0x344   : > { %1360 = shalt.err (!%p1357_p12)
}
 0x345   : > { %1252 = dma.vmem_to_hbm [thread:$0]  (%p1774_p9), %s1712_s28, 128, %s1710_s13, %s1111_s14  }
 0x346 PF: > { %p1264_p2 = scmp.ge.s32.totalorder %s1399_s18, 2  ;;  %s1136_s5 = sand.u32 1, %s1387_s15  }
 0x347   : > { %p1775_p3 = scmp.ne.s32.totalorder %s1768_s25, 0  ;;  %s1137_s19 = scalar_lea.sflag [#allocation5], %s1136_s5 }
 0x349   : > { %p1259_p4 = pnand %p1264_p2, %p1775_p3 }
 0x34b   : > { %1382 = dma.done.wait (!%p1259_p4), %s1137_s19, 128  }
 0x34c   : > { %1384 = vsyncadd (!%p1259_p4), %s1137_s19, 4294967168  ;;  %p23_p7 = scmp.ge.s32.totalorder %s1491_s20, 4   ;;  %s1776_s15 = smov %s1391_s16 }
 0x34d   : > { %s1777_s16 = smov %s1395_s17  ;;  %s1778_s17 = smov %s1502_s23 }
 0x34e   : > { %s1779_s18 = smov %s1491_s20  ;;  %25 = sbr.rel (!%p23_p7) target bundleno = 7 (0x7), region = 103 }
 0x355   :  { %1142 = vsyncpa [#allocation4], 1 }
 0x356   :  { %1144 = vsyncpa [#allocation4 + $0x1], 1 }
 0x357   :  { %1145 = vsyncpa [#allocation5], 1 }
 0x358   :  { %1147 = vsyncpa [#allocation5 + $0x1], 1 }

</bundles_post_ra>
